<compile_context>
chip_gen: v7x
topology: tpu7x:2x2x1
jax: 0.10.0
libtpu: 0.0.40
codegen_flags: <defaults>
</compile_context>

<pallas_src>
import functools
import math

import jax
import jax.numpy as jnp
import numpy as np
from jax.experimental import pallas as pl
from jax.experimental.pallas import tpu as pltpu

EPS = 1e-08


def _masked_block_linear_kernel(w_ref, wdiag_ref, dg_ref, bias_ref,
                                x_ref, xdiag_ref, y_ref, wpl_ref):
    blk = pl.program_id(0)                  # which block-row we own
    od, in_features = w_ref.shape           # rows per block, full input width
    idim = wdiag_ref.shape[-1]              # columns per block

    wt = w_ref[...]                         # (od, I)    raw weights, this block row
    wt_d = wdiag_ref[0]                     # (od, idim) block-diagonal slab of wt
    dg = dg_ref[...]                        # (od, 1)
    x = x_ref[...]                          # (B, I)
    x_d = xdiag_ref[0]                      # (B, idim)  x columns of the diag block

    # mask_o (strictly lower block-triangle): columns < blk * idim, built in-kernel.
    col = jax.lax.broadcasted_iota(jnp.int32, (od, in_features), 1)
    w_off = jnp.where(col < blk * idim, wt, 0.0)           # (od, I)

    # mask_d (positive block diagonal): exp only on the 1/dim slab.
    e_d = jnp.exp(wt_d)                                     # (od, idim)

    # Weight normalization: per-row squared norm and a single per-row scale.
    w_sq = (jnp.sum(w_off * w_off, axis=-1, keepdims=True)
            + jnp.sum(e_d * e_d, axis=-1, keepdims=True))   # (od, 1)
    s = jnp.exp(dg) / (jnp.sqrt(w_sq) + EPS)                # (od, 1)

    # Compact log-block-diagonal output (== wpl[mask_d].view(dim, od, idim)).
    wpl_ref[0] = dg + wt_d - 0.5 * jnp.log(w_sq + EPS)      # (od, idim)

    # y = x @ w.T + bias, split into (lower-triangular) + (diagonal) parts so
    # the diagonal contribution never has to be scattered back at a dynamic
    # lane offset.
    dot_nt = functools.partial(
        jax.lax.dot_general,
        dimension_numbers=(((1,), (1,)), ((), ())),
        precision=jax.lax.Precision.HIGHEST,
        preferred_element_type=jnp.float32)
    y = dot_nt(x, w_off * s) + dot_nt(x_d, e_d * s)         # (B, od)
    y_ref[0] = y + bias_ref[0]                              # bias (1, od) broadcasts


@functools.partial(jax.jit, static_argnames=("dim",))
def masked_block_linear_forward(x, weight, diag_weight, bias, *, dim):
    """x: (B, in_features, 1) f32.  Returns (y: (B, O), wpl: (dim, O//dim, I//dim))."""
    out_features, in_features = weight.shape
    od = out_features // dim
    idim = in_features // dim
    B = x.shape[0]

    x2d = x[..., 0]                                          # (B, I)
    # Block-diagonal slab of the raw weight, (dim, od, idim): static slices,
    # only 1/dim of the weight bytes (fused by XLA under jit).
    w_diag = jnp.stack(
        [jax.lax.slice(weight, (b * od, b * idim),
                       ((b + 1) * od, (b + 1) * idim))
         for b in range(dim)], axis=0)
    # x columns feeding each diagonal block, (dim, B, idim).
    x_diag = jnp.swapaxes(x2d.reshape(B, dim, idim), 0, 1)
    bias3 = bias.reshape(dim, 1, od)

    cost = pl.CostEstimate(
        flops=2 * B * out_features * (in_features + idim)
              + 10 * out_features * in_features,
        transcendentals=out_features * (idim + 3),
        bytes_accessed=4 * (out_features * in_features          # weight
                            + 2 * out_features * idim           # w_diag + wpl
                            + 2 * out_features                  # diag_weight, bias
                            + B * (in_features + dim * idim)    # x, x_diag
                            + B * out_features))                # y

    y3, wpl = pl.pallas_call(
        _masked_block_linear_kernel,
        grid=(dim,),
        in_specs=[
            pl.BlockSpec((od, in_features), lambda b: (b, 0)),   # weight row slab
            pl.BlockSpec((1, od, idim), lambda b: (b, 0, 0)),    # diag slab of weight
            pl.BlockSpec((od, 1), lambda b: (b, 0)),             # diag_weight
            pl.BlockSpec((1, 1, od), lambda b: (b, 0, 0)),       # bias
            pl.BlockSpec((B, in_features), lambda b: (0, 0)),    # x (replicated)
            pl.BlockSpec((1, B, idim), lambda b: (b, 0, 0)),     # x diag columns
        ],
        out_specs=(
            pl.BlockSpec((1, B, od), lambda b: (b, 0, 0)),       # y per block row
            pl.BlockSpec((1, od, idim), lambda b: (b, 0, 0)),    # compact wpl
        ),
        out_shape=(
            jax.ShapeDtypeStruct((dim, B, od), jnp.float32),
            jax.ShapeDtypeStruct((dim, od, idim), jnp.float32),
        ),
        compiler_params=pltpu.CompilerParams(
            dimension_semantics=("parallel",)),
        cost_estimate=cost,
    )(weight, w_diag, diag_weight, bias3, x2d, x_diag)

    y = jnp.swapaxes(y3, 0, 1).reshape(B, out_features)
    return y, wpl


def init_params(key, in_features, out_features, dim):
    """Deterministic synthetic init mirroring the PyTorch __init__ structure."""
    od = out_features // dim
    idim = in_features // dim
    k_w, k_d, k_b = jax.random.split(key, 3)

    row_blk = jnp.arange(out_features)[:, None] // od
    col_blk = jnp.arange(in_features)[None, :] // idim
    lower_or_diag = (col_blk <= row_blk).astype(jnp.float32)

    w_full = jax.random.uniform(k_w, (out_features, in_features),
                                jnp.float32, -1.0, 1.0)
    bounds = jnp.sqrt(6.0 / (od + (row_blk[:, 0] + 1) * idim)).astype(jnp.float32)
    weight = w_full * bounds[:, None] * lower_or_diag

    diag_weight = jnp.log(
        jax.random.uniform(k_d, (out_features, 1), jnp.float32, 1e-3, 1.0))
    b = 1.0 / math.sqrt(out_features)
    bias = jax.random.uniform(k_b, (out_features,), jnp.float32, -b, b)
    return weight, diag_weight, bias


def _reference(x, weight, diag_weight, bias, dim):
    """Pure-JAX reference matching the PyTorch module."""
    out_features, in_features = weight.shape
    od = out_features // dim
    idim = in_features // dim
    row_blk = jnp.arange(out_features)[:, None] // od
    col_blk = jnp.arange(in_features)[None, :] // idim
    mask_d = (row_blk == col_blk).astype(jnp.float32)
    mask_o = (col_blk < row_blk).astype(jnp.float32)

    w = jnp.exp(weight) * mask_d + weight * mask_o
    w_sq = jnp.sum(w ** 2, axis=-1, keepdims=True)
    w = jnp.exp(diag_weight) * w / (jnp.sqrt(w_sq) + EPS)
    wpl_full = diag_weight + weight - 0.5 * jnp.log(w_sq + EPS)
    y = (jnp.matmul(w, x, precision=jax.lax.Precision.HIGHEST)
         + bias[:, None])[..., 0]
    blk = jnp.arange(dim)
    wpl = wpl_full.reshape(dim, od, dim, idim)[blk, :, blk, :]
    return y, wpl


if __name__ == "__main__":
    dim = 4
    in_features = 32      # 8 per block
    out_features = 64     # 16 per block
    batch = 2

    key = jax.random.PRNGKey(0)
    k_params, k_x = jax.random.split(key)
    weight, diag_weight, bias = init_params(k_params, in_features, out_features, dim)

    # x: (B, in_features, 1) to match torch.matmul(w, x) semantics
    x = jax.random.normal(k_x, (batch, in_features, 1), jnp.float32)

    y, wpl = masked_block_linear_forward(x, weight, diag_weight, bias, dim=dim)
    jax.block_until_ready((y, wpl))

    # sanity check against pure-JAX reference
    y_ref, wpl_ref = _reference(x, weight, diag_weight, bias, dim)
    assert y.shape == (batch, out_features)
    assert wpl.shape == (dim, out_features // dim, in_features // dim)
    np.testing.assert_allclose(np.asarray(y), np.asarray(y_ref),
                               rtol=1e-5, atol=1e-5)
    np.testing.assert_allclose(np.asarray(wpl), np.asarray(wpl_ref),
                               rtol=1e-5, atol=1e-5)

    print("KERNEL_OK")
</pallas_src>

<mosaic_0001>
module attributes {stable_mosaic.version = 11 : i64} {
  func.func @_masked_block_linear_kernel(%arg0: i32, %arg1: memref<16x32xf32, #tpu.memory_space<vmem>>, %arg2: memref<1x16x8xf32, #tpu.memory_space<vmem>>, %arg3: memref<16x1xf32, #tpu.memory_space<vmem>>, %arg4: memref<1x1x16xf32, #tpu.memory_space<vmem>>, %arg5: memref<2x32xf32, #tpu.memory_space<vmem>>, %arg6: memref<1x2x8xf32, #tpu.memory_space<vmem>>, %arg7: memref<1x2x16xf32, #tpu.memory_space<vmem>>, %arg8: memref<1x16x8xf32, #tpu.memory_space<vmem>>) attributes {dimension_semantics = [#tpu.dimension_semantics<parallel>], iteration_bounds = array<i64: 4>, scalar_prefetch = 0 : i64, scratch_operands = 0 : i64, tpu.core_type = #tpu.core_type<tc>, window_params = [{transform_indices = @transform_0, window_bounds = array<i64: 16, 32>}, {transform_indices = @transform_1, window_bounds = array<i64: 1, 16, 8>}, {transform_indices = @transform_2, window_bounds = array<i64: 16, 1>}, {transform_indices = @transform_3, window_bounds = array<i64: 1, 1, 16>}, {pipeline_mode = #tpu.pipeline_mode<synchronous>, transform_indices = @transform_4, window_bounds = array<i64: 2, 32>}, {transform_indices = @transform_5, window_bounds = array<i64: 1, 2, 8>}, {transform_indices = @transform_6, window_bounds = array<i64: 1, 2, 16>}, {transform_indices = @transform_7, window_bounds = array<i64: 1, 16, 8>}]} {
    %c0 = arith.constant 0 : index
    %c0_0 = arith.constant 0 : index
    %0 = vector.load %arg1[%c0, %c0_0] : memref<16x32xf32, #tpu.memory_space<vmem>>, vector<16x32xf32>
    %c0_1 = arith.constant 0 : index
    %c0_2 = arith.constant 0 : index
    %c0_3 = arith.constant 0 : index
    %1 = vector.load %arg2[%c0_1, %c0_2, %c0_3] : memref<1x16x8xf32, #tpu.memory_space<vmem>>, vector<1x16x8xf32>
    %2 = vector.shape_cast %1 : vector<1x16x8xf32> to vector<16x8xf32>
    %c0_4 = arith.constant 0 : index
    %c0_5 = arith.constant 0 : index
    %3 = vector.load %arg3[%c0_4, %c0_5] : memref<16x1xf32, #tpu.memory_space<vmem>>, vector<16x1xf32>
    %c0_6 = arith.constant 0 : index
    %c0_7 = arith.constant 0 : index
    %4 = vector.load %arg5[%c0_6, %c0_7] : memref<2x32xf32, #tpu.memory_space<vmem>>, vector<2x32xf32>
    %c0_8 = arith.constant 0 : index
    %c0_9 = arith.constant 0 : index
    %c0_10 = arith.constant 0 : index
    %5 = vector.load %arg6[%c0_8, %c0_9, %c0_10] : memref<1x2x8xf32, #tpu.memory_space<vmem>>, vector<1x2x8xf32>
    %6 = vector.shape_cast %5 : vector<1x2x8xf32> to vector<2x8xf32>
    %7 = tpu.iota {dimensions = array<i32: 1>} : vector<16x32xi32>
    %c8_i32 = arith.constant 8 : i32
    %8 = arith.muli %arg0, %c8_i32 : i32
    %9 = vector.broadcast %8 : i32 to vector<16x32xi32>
    %10 = arith.cmpi slt, %7, %9 : vector<16x32xi32>
    %cst = arith.constant 0.000000e+00 : f32
    %11 = vector.broadcast %cst : f32 to vector<16x32xf32>
    %12 = arith.select %10, %0, %11 : vector<16x32xi1>, vector<16x32xf32>
    %13 = math.exp %2 : vector<16x8xf32>
    %14 = arith.mulf %12, %12 : vector<16x32xf32>
    %cst_11 = arith.constant dense<0.000000e+00> : vector<16xf32>
    %15 = vector.multi_reduction <add>, %14, %cst_11 [1] : vector<16x32xf32> to vector<16xf32>
    %16 = vector.shape_cast %15 : vector<16xf32> to vector<16x1xf32>
    %17 = arith.mulf %13, %13 : vector<16x8xf32>
    %cst_12 = arith.constant dense<0.000000e+00> : vector<16xf32>
    %18 = vector.multi_reduction <add>, %17, %cst_12 [1] : vector<16x8xf32> to vector<16xf32>
    %19 = vector.shape_cast %18 : vector<16xf32> to vector<16x1xf32>
    %20 = arith.addf %16, %19 : vector<16x1xf32>
    %21 = math.exp %3 : vector<16x1xf32>
    %22 = math.sqrt %20 : vector<16x1xf32>
    %cst_13 = arith.constant 9.99999993E-9 : f32
    %23 = vector.broadcast %cst_13 : f32 to vector<16x1xf32>
    %24 = arith.addf %22, %23 : vector<16x1xf32>
    %25 = arith.divf %21, %24 : vector<16x1xf32>
    %26 = vector.broadcast %3 : vector<16x1xf32> to vector<16x8xf32>
    %27 = arith.addf %26, %2 : vector<16x8xf32>
    %cst_14 = arith.constant 9.99999993E-9 : f32
    %28 = vector.broadcast %cst_14 : f32 to vector<16x1xf32>
    %29 = arith.addf %20, %28 : vector<16x1xf32>
    %30 = math.log %29 : vector<16x1xf32>
    %cst_15 = arith.constant 5.000000e-01 : f32
    %31 = vector.broadcast %cst_15 : f32 to vector<16x1xf32>
    %32 = arith.mulf %31, %30 : vector<16x1xf32>
    %33 = vector.broadcast %32 : vector<16x1xf32> to vector<16x8xf32>
    %34 = arith.subf %27, %33 : vector<16x8xf32>
    %c0_16 = arith.constant 0 : index
    %c0_17 = arith.constant 0 : index
    %c0_18 = arith.constant 0 : index
    %35 = vector.load %arg8[%c0_16, %c0_17, %c0_18] : memref<1x16x8xf32, #tpu.memory_space<vmem>>, vector<1x16x8xf32>
    %36 = vector.shape_cast %35 : vector<1x16x8xf32> to vector<16x8xf32>
    %37 = vector.shape_cast %34 : vector<16x8xf32> to vector<1x16x8xf32>
    tpu.vector_store %arg8[%c0_16, %c0_17, %c0_18], %37 {strides = array<i32>} : memref<1x16x8xf32, #tpu.memory_space<vmem>>, vector<1x16x8xf32>,
    %38 = vector.broadcast %25 : vector<16x1xf32> to vector<16x32xf32>
    %39 = arith.mulf %12, %38 : vector<16x32xf32>
    %cst_19 = arith.constant dense<0.000000e+00> : vector<2x16xf32>
    %40 = tpu.matmul %4, %39, %cst_19 {dimension_numbers = #tpu.dot_dimension_numbers<[1], [1], [0], [0], [0, 0, 1, 0], [], []>, precision = #tpu.contract_precision<fp32>} : vector<2x32xf32>, vector<16x32xf32>, vector<2x16xf32> -> vector<2x16xf32>
    %41 = vector.broadcast %25 : vector<16x1xf32> to vector<16x8xf32>
    %42 = arith.mulf %13, %41 : vector<16x8xf32>
    %cst_20 = arith.constant dense<0.000000e+00> : vector<2x16xf32>
    %43 = tpu.matmul %6, %42, %cst_20 {dimension_numbers = #tpu.dot_dimension_numbers<[1], [1], [0], [0], [0, 0, 1, 0], [], []>, precision = #tpu.contract_precision<fp32>} : vector<2x8xf32>, vector<16x8xf32>, vector<2x16xf32> -> vector<2x16xf32>
    %44 = arith.addf %40, %43 : vector<2x16xf32>
    %c0_21 = arith.constant 0 : index
    %c0_22 = arith.constant 0 : index
    %c0_23 = arith.constant 0 : index
    %45 = vector.load %arg4[%c0_21, %c0_22, %c0_23] : memref<1x1x16xf32, #tpu.memory_space<vmem>>, vector<1x1x16xf32>
    %46 = vector.shape_cast %45 : vector<1x1x16xf32> to vector<1x16xf32>
    %47 = vector.broadcast %46 : vector<1x16xf32> to vector<2x16xf32>
    %48 = arith.addf %44, %47 : vector<2x16xf32>
    %c0_24 = arith.constant 0 : index
    %c0_25 = arith.constant 0 : index
    %c0_26 = arith.constant 0 : index
    %49 = vector.load %arg7[%c0_24, %c0_25, %c0_26] : memref<1x2x16xf32, #tpu.memory_space<vmem>>, vector<1x2x16xf32>
    %50 = vector.shape_cast %49 : vector<1x2x16xf32> to vector<2x16xf32>
    %51 = vector.shape_cast %48 : vector<2x16xf32> to vector<1x2x16xf32>
    tpu.vector_store %arg7[%c0_24, %c0_25, %c0_26], %51 {strides = array<i32>} : memref<1x2x16xf32, #tpu.memory_space<vmem>>, vector<1x2x16xf32>,
    return
  }
  func.func @transform_0(%arg0: i32) -> (i32, i32) {
    %c0_i32 = arith.constant 0 : i32
    %c0_i32_0 = arith.constant 0 : i32
    return %arg0, %c0_i32 : i32, i32
  }
  func.func @transform_1(%arg0: i32) -> (i32, i32, i32) {
    %c0_i32 = arith.constant 0 : i32
    %c0_i32_0 = arith.constant 0 : i32
    %c0_i32_1 = arith.constant 0 : i32
    return %arg0, %c0_i32, %c0_i32_0 : i32, i32, i32
  }
  func.func @transform_2(%arg0: i32) -> (i32, i32) {
    %c0_i32 = arith.constant 0 : i32
    %c0_i32_0 = arith.constant 0 : i32
    return %arg0, %c0_i32 : i32, i32
  }
  func.func @transform_3(%arg0: i32) -> (i32, i32, i32) {
    %c0_i32 = arith.constant 0 : i32
    %c0_i32_0 = arith.constant 0 : i32
    %c0_i32_1 = arith.constant 0 : i32
    return %arg0, %c0_i32, %c0_i32_0 : i32, i32, i32
  }
  func.func @transform_4(%arg0: i32) -> (i32, i32) {
    %c0_i32 = arith.constant 0 : i32
    %c0_i32_0 = arith.constant 0 : i32
    %c0_i32_1 = arith.constant 0 : i32
    return %c0_i32, %c0_i32_0 : i32, i32
  }
  func.func @transform_5(%arg0: i32) -> (i32, i32, i32) {
    %c0_i32 = arith.constant 0 : i32
    %c0_i32_0 = arith.constant 0 : i32
    %c0_i32_1 = arith.constant 0 : i32
    return %arg0, %c0_i32, %c0_i32_0 : i32, i32, i32
  }
  func.func @transform_6(%arg0: i32) -> (i32, i32, i32) {
    %c0_i32 = arith.constant 0 : i32
    %c0_i32_0 = arith.constant 0 : i32
    %c0_i32_1 = arith.constant 0 : i32
    return %arg0, %c0_i32, %c0_i32_0 : i32, i32, i32
  }
  func.func @transform_7(%arg0: i32) -> (i32, i32, i32) {
    %c0_i32 = arith.constant 0 : i32
    %c0_i32_0 = arith.constant 0 : i32
    %c0_i32_1 = arith.constant 0 : i32
    return %arg0, %c0_i32, %c0_i32_0 : i32, i32, i32
  }
}

</mosaic_0001>

<bundles_post_ra>
// kernel: squeeze.3
= control target key start
LH: loop header
LB: loop body
LE: loop exit
PB: predicated region body
PF: predicated region fallthrough
CT: control target
= control target key end

     0   :  { %s43_s8 = smov 104   ;;  %vm7_vm0 = vcmask 64512   ;;  %s44_s9 = smov 112   ;;  %s64_s0 = inlined_call_operand.vmem [shape: f32[2,32], index: 0, kind: input, shape index: {}]   ;;  %s65_s1 = inlined_call_operand.vmem [shape: f32[2,4,8], index: 1, kind: output, shape index: {}]  }
   0x1   :  { %v4_v0 = vld [vmem:[%s64_s0] sm:$0x3]  ;;  %s42_s0 = smov 120  }
   0x2   :  { %5 = vst [vmem:[#allocation1] sm:$0x3] %v4_v0 }
   0x9   :  { %v9_v1 = vld [vmem:[#allocation1] sm:$0x3]  }
   0xa   :  { %v21_v2 = vld [vmem:[#allocation1] sm:$0x3]   ;;  %10 = vrot.lane.b32.xlu0 %v9_v1, %s42_s0 }
   0xb   :  { %22 = vrot.lane.b32.xlu1 %v21_v2, %s43_s8  ;;  %v6_v3 = vld [vmem:[#allocation1] sm:$0x3]  }
   0xc   :  { %v15_v4 = vld [vmem:[#allocation1] sm:$0x3]   ;;  %8 = vst.msk [vmem:[#allocation0] ss:$8 sm:$0x3] %vm7_vm0, %v6_v3  }
   0xe   :  { %16 = vrot.lane.b32.xlu0 %v15_v4, %s44_s9 }
  0x7c   :  { %v11_v5 = vpop.permute.xlu0 %10  }
  0x7d   :  { %v23_v6 = vpop.permute.xlu1 %22   ;;  %14 = vst.msk [vmem:[#allocation0 + $0x1] ss:$8 sm:$0x3] %vm7_vm0, %v11_v5  }
  0x7e   :  { %26 = vst.msk [vmem:[#allocation0 + $0x3] ss:$8 sm:$0x3] %vm7_vm0, %v23_v6  }
  0x80   :  { %v17_v7 = vpop.permute.xlu0 %16  }
  0x81   :  { %20 = vst.msk [vmem:[#allocation0 + $0x2] ss:$8 sm:$0x3] %vm7_vm0, %v17_v7  }
  0x88   :  { %v30_v8 = vld [vmem:[#allocation0] sm:$0xf]  ;;  %v34_v9 = vld [vmem:[#allocation0 + $0x8] sm:$0xf] }
  0x89   :  { %32 = vst [vmem:[%s65_s1] sm:$0xf] %v30_v8  ;;  %38 = vst [vmem:[%s65_s1 + $0x4] sm:$0xf] %v34_v9 }

// kernel: masked_block_linear_forward.1
= control target key start
LH: loop header
LB: loop body
LE: loop exit
PB: predicated region body
PF: predicated region fallthrough
CT: control target
= control target key end

     0   :  { %s1806_s24 = smov 0   ;;  %s1948_s0 = inlined_call_operand.vmem [shape: f32[64,32], index: 0, kind: input, shape index: {}]   ;;  %s1949_s1 = inlined_call_operand.vmem [shape: f32[4,16,8], index: 1, kind: input, shape index: {}]   ;;  %s1950_s2 = inlined_call_operand.vmem [shape: f32[64,1], index: 2, kind: input, shape index: {}]   ;;  %s1951_s3 = inlined_call_operand.vmem [shape: f32[4,1,16], index: 3, kind: input, shape index: {}]   ;;  %s1952_s4 = inlined_call_operand.vmem [shape: f32[2,32], index: 4, kind: input, shape index: {}]   ;;  %s1953_s5 = inlined_call_operand.vmem [shape: f32[4,2,8], index: 5, kind: input, shape index: {}]   ;;  %s1954_s6 = inlined_call_operand.vmem [shape: f32[4,2,16], index: 6, kind: output, shape index: {0}]   ;;  %s1955_s7 = inlined_call_operand.vmem [shape: f32[4,16,8], index: 7, kind: output, shape index: {1}]  }
   0x1 LB: > { %s1543_s25 = sadd.s32 4294967295, %s1760_s24   ;;  %p1547_p0 = scmp.ge.s32.totalorder %s1760_s24, 1  ;;  %s1760_s24 = sphi %s1806_s24, %s18_s24  }
   0x2   : > { %p279_p1 = scmp.lt.s32.totalorder %s1760_s24, 5 }
   0x4   : > { %p280_p2 = pnand %p1547_p0, %p279_p1 }
   0x5   : > { %p338_p3 = scmp.lt.s32.totalorder (!%p280_p2), %s1543_s25, 3  ;;  %s1548_s26 = sshll.u32 (!%p280_p2), %s1543_s25, 1  ;;  %v373_v0 = vlaneseq (!%p280_p2)  ;;  %vm386_vm1 = vcmask (!%p280_p2), 261120   ;;  %vm395_vm2 = vcmask (!%p280_p2), 64512   ;;  %v1762_v21 = vmov (!%p280_p2), 0  }
   0x6   : > { %283 = sbr.rel (%p280_p2) target bundleno = 618 (0x26a), region = 44  ;;  %p333_p4 = scmp.lt.s32.totalorder (!%p280_p2), %s1548_s26, 7  ;;  %1732 = vset.pattern.permute.xlu0 (!%p280_p2), %v1762_v21  ;;  %1733 = vset.pattern.permute.xlu1 (!%p280_p2), %v1762_v21  ;;  %v1763_v50 = vmov (!%p280_p2), 0.0|0.0   ;;  %vm1764_vm7 = vmmov (!%p280_p2), 0   ;;  %v1765_v51 = vmov (!%p280_p2), 0.0   ;;  %vm1410_vm8 = vcmask (!%p280_p2), 123904  }
   0x7   : > { %s1558_s27 = sshll.u32 (!%p280_p2), %s1543_s25, 3  ;;  %v374_v1 = vand.u32 (!%p280_p2), 127, %v373_v0  ;;  %1684 = vmatprep.subr.bf16.mxu0 (!%p280_p2), %v1763_v50  ;;  %1687 = vmatprep.subr.bf16.mxu1 (!%p280_p2), %v1763_v50 }
   0x8   : > { %v376_v2 = vstv (!%p280_p2), %s1558_s27  ;;  %1604 = vmatprep.mubr.msk.f32.mxu0 (!%p280_p2), %vm1764_vm7, %v1765_v51  ;;  %1611 = vmatprep.mubr.msk.f32.mxu1 (!%p280_p2), %vm1764_vm7, %v1765_v51 }
   0x9   : > { %vm377_vm0 = vcmp.lt.s32.totalorder (!%p280_p2), %v374_v1, %v376_v2 }
   0xd   : > { %s1957_s25 = smov (!%p338_p3, %s1543_s25), 3  ;;  %s1959_s26 = smov (!%p333_p4, %s1548_s26), 7 }
   0xe   : > { %s1562_s28 = sshll.u32 %s1957_s25, 4  ;;  %s1549_s9 = sshll.u32 %s1959_s26, 3 }
   0xf   : > { %s342_s8 = scalar_lea.vmem %s1949_s1, %s1562_s28  ;;  %s336_s12 = scalar_lea.vmem %s1948_s0, %s1549_s9 }
  0x10   : > { %v1825_v3 = vld [vmem:[%s342_s8] sm:$0xff]  ;;  %v1832_v4 = vld [vmem:[%s342_s8 + $0x8] sm:$0xff]  ;;  %s347_s15 = scalar_lea.vmem %s1950_s2, %s1549_s9  ;;  %s1554_s16 = sshll.u32 %s1957_s25, 1 }
  0x11   : > { %v380_v5 = vmul.f32 1.442695, %v1825_v3  ;;  %v365_v6 = vld [vmem:[%s336_s12] sm:$0xff]  ;;  %v366_v8 = vld [vmem:[%s336_s12 + $0x8] sm:$0xff]  ;;  %v382_v10 = vmul.f32 1.442695, %v1832_v4  ;;  %s355_s19 = scalar_lea.vmem %s1953_s5, %s1554_s16  ;;  %s364_s22 = scalar_lea.vmem %s1955_s7, %s1562_s28 }
  0x12   : > { %v1835_v7 = vsel %vm377_vm0, %v365_v6, 0.0  ;;  %v1840_v11 = vsel %vm377_vm0, %v366_v8, 0.0  ;;  %v369_v28 = vld [vmem:[%s347_s15] sm:$0xff]  ;;  %v370_v32 = vld [vmem:[%s347_s15 + $0x8] sm:$0xff]  ;;  %s351_s29 = scalar_lea.vmem %s1951_s3, %s1957_s25  ;;  %s359_s9 = scalar_lea.vmem %s1954_s6, %s1554_s16 }
  0x13   : > { %1734 = vpow2.f32 %v380_v5  ;;  %v384_v9 = vmul.f32 %v1835_v7, %v1835_v7  ;;  %v385_v12 = vmul.f32 %v1840_v11, %v1840_v11  ;;  %v404_v30 = vmul.f32 1.442695, %v369_v28  ;;  %v372_v54 = vld [vmem:[%s355_s19] sm:$0x3] }
  0x14   : > { %1736 = vpow2.f32 %v382_v10  ;;  %v406_v37 = vmul.f32 1.442695, %v370_v32  ;;  %v467_v55 = vsel %vm395_vm2, %v372_v54, 0 }
  0x15   : > { %v387_v13 = vsel %vm386_vm1, %v384_v9, 0.0  ;;  %v390_v14 = vsel %vm386_vm1, %v385_v12, 0.0  ;;  %v1874_v57 = vand.u32 4294901760, %v467_v55 }
  0x16   : > { %388 = vadd.xlane.f32.xlu0 %v387_v13 }
  0x17   : > { %v1879_v63 = vsub.f32 %v467_v55, %v1874_v57 }
  0x19   : > { %v544_v10 = vand.u32 4294901760, %v1879_v63 }
  0x1a   : > { %391 = vadd.xlane.f32.xlu0 %v390_v14 }
  0x1d   : > { %v1846_v15 = vpop.eup %1734 }
  0x1e   : > { %v393_v16 = vmul.f32 %v1846_v15, %v1846_v15  ;;  %v1850_v17 = vpop.eup %1736 }
  0x1f   : > { %v394_v19 = vmul.f32 %v1850_v17, %v1850_v17 }
  0x20   : > { %v396_v18 = vsel %vm395_vm2, %v393_v16, 0.0 }
  0x21   : > { %397 = vadd.xlane.f32.xlu1 %v396_v18  ;;  %v399_v20 = vsel %vm395_vm2, %v394_v19, 0.0 }
  0x25   : > { %400 = vadd.xlane.f32.xlu1 %v399_v20  ;;  %v545_v20 = vsub.f32 %v1879_v63, %v544_v10 }
  0xa3   : > { %v389_v22 = vpop.xlane.xlu0 %388 }
  0xa7   : > { %v392_v25 = vpop.xlane.xlu0 %391 }
  0xae   : > { %v398_v23 = vpop.xlane.xlu1 %397 }
  0xaf   : > { %v402_v24 = vadd.f32 %v398_v23, %v389_v22 }
  0xb1   : > { %1738 = vrsqrt.f32 %v402_v24  ;;  %vm410_vm3 = vcmp.eq.f32.partialorder %v402_v24, inf  ;;  %v413_v33 = vand.u32 2147483648, %v402_v24  ;;  %vm412_vm4 = vcmp.eq.f32.partialorder %v402_v24, 0.0 }
  0xb2   : > { %v401_v26 = vpop.xlane.xlu1 %400  ;;  %v440_v52 = vadd.f32 1e-08, %v402_v24 }
  0xb3   : > { %v403_v27 = vadd.f32 %v401_v26, %v392_v25 }
  0xb5   : > { %1740 = vrsqrt.f32 %v403_v27  ;;  %vm417_vm5 = vcmp.eq.f32.partialorder %v403_v27, inf  ;;  %v420_v40 = vand.u32 2147483648, %v403_v27  ;;  %vm419_vm6 = vcmp.eq.f32.partialorder %v403_v27, 0.0 }
  0xb6   : > { %1742 = vpow2.f32 %v404_v30  ;;  %v441_v53 = vadd.f32 1e-08, %v403_v27 }
  0xbb   : > { %v1739_v29 = vpop.eup %1738 }
  0xbc   : > { %v409_v31 = vmul.f32 %v1739_v29, %v402_v24 }
  0xbe   : > { %v411_v34 = vsel %vm410_vm3, %v402_v24, %v409_v31  ;;  %v371_v31 = vld [vmem:[%s1952_s4] sm:$0x3] }
  0xbf   : > { %v1741_v35 = vpop.eup %1740  ;;  %v414_v36 = vsel %vm412_vm4, %v413_v33, %v411_v34 }
  0xc0   : > { %v422_v38 = vadd.f32 1e-08, %v414_v36  ;;  %v416_v39 = vmul.f32 %v1741_v35, %v403_v27  ;;  %v1743_v44 = vpop.eup %1742 }
  0xc2   : > { %1744 = vrcp.f32 %v422_v38  ;;  %v418_v41 = vsel %vm417_vm5, %v403_v27, %v416_v39  ;;  %v546_v27 = vand.u32 4294901760, %v545_v20 }
  0xc3   : > { %v421_v42 = vsel %vm419_vm6, %v420_v40, %v418_v41  ;;  %1746 = vpow2.f32 %v406_v37 }
  0xc4   : > { %v423_v43 = vadd.f32 1e-08, %v421_v42 }
  0xc6   : > { %1748 = vrcp.f32 %v423_v43 }
  0xc7   : > { %1750 = vlog2.f32 %v440_v52 }
  0xc8   : > { %1752 = vlog2.f32 %v441_v53 }
  0xcc   : > { %v1745_v45 = vpop.eup %1744 }
  0xcd   : > { %v425_v46 = vmul.f32 %v1745_v45, %v1743_v44  ;;  %v1747_v47 = vpop.eup %1746 }
  0xcf   : > { %454 = vperm.xlu0 %1732, %v425_v46  }
  0xd0   : > { %v1749_v48 = vpop.eup %1748 }
  0xd1   : > { %v427_v49 = vmul.f32 %v1749_v48, %v1747_v47  ;;  %v1751_v59 = vpop.eup %1750 }
  0xd2   : > { %v443_v1 = vmul.f32 0.6931472, %v1751_v59  ;;  %v1753_v2 = vpop.eup %1752 }
  0xd3   : > { %459 = vperm.xlu1 %1733, %v427_v49  }
  0xd4   : > { %v446_v13 = vmul.f32 0.5, %v443_v1 }
  0xd7   : > { %430 = vperm.xlu1 %1733, %v369_v28  }
  0xdb   : > { %435 = vperm.xlu1 %1733, %v370_v32  }
 0x14e   : > { %v455_v56 = vpop.permute.xlu0 %454 }
 0x14f   : > { %v464_v58 = vmul.f32 %v1846_v15, %v455_v56  ;;  %v445_v15 = vmul.f32 0.6931472, %v1753_v2  ;;  %v462_v30 = vmul.f32 %v455_v56, %v1835_v7 }
 0x151   : > { %v470_v60 = vsel %vm395_vm2, %v464_v58, 0  ;;  %v447_v23 = vmul.f32 0.5, %v445_v15  ;;  %v938_v34 = vsel %vm386_vm1, %v462_v30, 0 }
 0x152   : > { %v476_v61 = vand.u32 4294901760, %v470_v60  ;;  %v460_v62 = vpop.permute.xlu1 %459  ;;  %v944_v36 = vand.u32 4294901760, %v938_v34 }
 0x153   : > { %v465_v0 = vmul.f32 %v1850_v17, %v460_v62  ;;  %v463_v25 = vmul.f32 %v460_v62, %v1840_v11  ;;  %v935_v11 = vsel %vm386_vm1, %v371_v31, 0 }
 0x154   : > { %v554_v5 = vsub.f32 %v470_v60, %v476_v61  ;;  %v1010_v35 = vand.u32 4294901760, %v935_v11  ;;  %v1022_v39 = vsub.f32 %v938_v34, %v944_v36 }
 0x155   : > { %v473_v6 = vsel %vm395_vm2, %v465_v0, 0 }
 0x156   : > { %v479_v8 = vand.u32 4294901760, %v473_v6  ;;  %v431_v9 = vpop.permute.xlu1 %430  ;;  %v555_v12 = vand.u32 4294901760, %v554_v5  ;;  %v1011_v40 = vsub.f32 %v935_v11, %v1010_v35  ;;  %v1023_v42 = vand.u32 4294901760, %v1022_v39 }
 0x157   : > { %v438_v14 = vadd.f32 %v431_v9, %v1825_v3 }
 0x158   : > { %v561_v16 = vsub.f32 %v473_v6, %v479_v8  ;;  %v1685_v18 = vpack.c.bf16 %v479_v8, %v476_v61  ;;  %v556_v21 = vsub.f32 %v554_v5, %v555_v12  ;;  %v1012_v43 = vand.u32 4294901760, %v1011_v40 }
 0x159   : > { %v448_v17 = vsub.f32 %v438_v14, %v446_v13  ;;  %v1024_v46 = vsub.f32 %v1022_v39, %v1023_v42 }
 0x15a   : > { %v436_v19 = vpop.permute.xlu1 %435  ;;  %v562_v22 = vand.u32 4294901760, %v561_v16  ;;  %1686 = vmatpush3.bf16.xpose.msra.mxu0 %v1685_v18  ;;  %v557_v28 = vand.u32 4294901760, %v556_v21  ;;  %v1691_v33 = vpack.c.bf16 %v561_v16, %v554_v5  ;;  %v1013_v47 = vsub.f32 %v1011_v40, %v1012_v43 }
 0x15b   : > { %450 = vst.msk [vmem:[%s364_s22] sm:$0xff] %vm395_vm2, %v448_v17  ;;  %v439_v24 = vadd.f32 %v436_v19, %v1832_v4  ;;  %1690 = vmatprep.subr.bf16.mxu0 %v1763_v50  ;;  %v941_v4 = vsel %vm386_vm1, %v463_v25, 0  ;;  %v1025_v49 = vand.u32 4294901760, %v1024_v46 }
 0x15c   : > { %v563_v3 = vsub.f32 %v561_v16, %v562_v22  ;;  %v947_v7 = vand.u32 4294901760, %v941_v4  ;;  %v1697_v38 = vpack.c.bf16 %v562_v22, %v555_v12  ;;  %v1014_v52 = vand.u32 4294901760, %v1013_v47 }
 0x15d   : > { %v449_v26 = vsub.f32 %v439_v24, %v447_v23 }
 0x15e   : > { %v564_v29 = vand.u32 4294901760, %v563_v3  ;;  %v1029_v37 = vsub.f32 %v941_v4, %v947_v7  ;;  %v1703_v45 = vpack.c.bf16 %v947_v7, %v944_v36 }
 0x15f   : > { %451 = vst.msk [vmem:[%s364_s22 + $0x8] sm:$0xff] %vm395_vm2, %v449_v26  ;;  %v1559_v26 = vld [vmem:[%s351_s29] ss:$0 sm:$0xff] }
 0x160   : > { %v1688_v32 = vpack.c.bf16 %v564_v29, %v557_v28  ;;  %v1030_v41 = vand.u32 4294901760, %v1029_v37  ;;  %v1709_v54 = vpack.c.bf16 %v1029_v37, %v1022_v39 }
 0x161   : > { %1605 = vmatmul.mubr.f32.vlgmr.msra.gmra.mrb[0].mxu0 %v546_v27 }
 0x162   : > { %1689 = vmatpush3.bf16.xpose.msra.mxu1 %v1688_v32  ;;  %1692 = vmatpush3.bf16.xpose.msra.mxu0 %v1691_v33  ;;  %v1031_v44 = vsub.f32 %v1029_v37, %v1030_v41  ;;  %v1715_v55 = vpack.c.bf16 %v1030_v41, %v1023_v42 }
 0x163   : > { %1618 = vmatprep.mubr.msk.f32.mxu0 %vm1764_vm7, %v1765_v51  ;;  %1693 = vmatprep.subr.bf16.mxu1 %v1763_v50 }
 0x164   : > { %1696 = vmatprep.subr.bf16.mxu0 %v1763_v50  ;;  %v1032_v48 = vand.u32 4294901760, %v1031_v44 }
 0x166   : > { %v1706_v53 = vpack.c.bf16 %v1032_v48, %v1025_v49 }
 0x169   : > { %1612 = vmatmul.mubr.f32.vlgmr.msra.gmra.mrb[0].mxu1 %v1874_v57  ;;  %1619 = vmatmul.mubr.f32.vlgmr.msra.gmra.mrb[2].mxu0 %v1879_v63 }
 0x16a   : > { %1695 = vmatpush3.bf16.xpose.msra.mxu1 %v1685_v18  ;;  %1698 = vmatpush3.bf16.xpose.msra.mxu0 %v1697_v38 }
 0x16b   : > { %1625 = vmatprep.mubr.msk.f32.mxu1 %vm1764_vm7, %v1765_v51  ;;  %1632 = vmatprep.mubr.msk.f32.mxu0 %vm1764_vm7, %v1765_v51 }
 0x16c   : > { %1699 = vmatprep.subr.bf16.mxu1 %v1763_v50  ;;  %1702 = vmatprep.subr.bf16.mxu0 %v1763_v50 }
 0x171   : > { %1626 = vmatmul.mubr.f32.vlgmr.msra.gmra.mrb[2].mxu1 %v544_v10  ;;  %1633 = vmatmul.mubr.f32.vlgmr.msra.gmra.mrb[4].mxu0 %v1874_v57 }
 0x172   : > { %1701 = vmatpush3.bf16.xpose.msra.mxu1 %v1685_v18  ;;  %1704 = vmatpush3.bf16.xpose.msra.mxu0 %v1703_v45 }
 0x173   : > { %1639 = vmatprep.mubr.msk.f32.mxu1 %vm1764_vm7, %v1765_v51  ;;  %1646 = vmatprep.mubr.msk.f32.mxu0 %vm1764_vm7, %v1765_v51 }
 0x174   : > { %1705 = vmatprep.subr.bf16.mxu1 %v1763_v50  ;;  %1708 = vmatprep.subr.bf16.mxu0 %v1763_v50 }
 0x179   : > { %1640 = vmatmul.mubr.f32.vlgmr.msra.gmra.mrb[4].mxu1 %v1874_v57  ;;  %1647 = vmatmul.mubr.f32.vlgmr.msra.gmra.mrb[6].mxu0 %v1014_v52 }
 0x17a   : > { %1707 = vmatpush3.bf16.xpose.msra.mxu1 %v1706_v53  ;;  %1710 = vmatpush3.bf16.xpose.msra.mxu0 %v1709_v54 }
 0x17b   : > { %1653 = vmatprep.mubr.msk.f32.mxu1 %vm1764_vm7, %v1765_v51  ;;  %1660 = vmatprep.mubr.msk.f32.mxu0 %vm1764_vm7, %v1765_v51 }
 0x17c   : > { %1711 = vmatprep.subr.bf16.mxu1 %v1763_v50  ;;  %1714 = vmatprep.subr.bf16.mxu0 %v1763_v50 }
 0x181   : > { %1654 = vmatmul.mubr.f32.vlgmr.msra.gmra.mrb[6].mxu1 %v1010_v35  ;;  %1661 = vmatmul.mubr.f32.vlgmr.msra.gmra.mrb[8].mxu0 %v1011_v40 }
 0x182   : > { %1713 = vmatpush3.bf16.xpose.msra.mxu1 %v1703_v45  ;;  %1716 = vmatpush3.bf16.xpose.msra.mxu0 %v1715_v55 }
 0x183   : > { %1667 = vmatprep.mubr.msk.f32.mxu1 %vm1764_vm7, %v1765_v51  ;;  %1717 = vmatprep.subr.bf16.mxu1 %v1763_v50 }
 0x184   : > { %1674 = vmatprep.mubr.msk.f32.mxu0 %vm1764_vm7, %v1765_v51 }
 0x189   : > { %1668 = vmatmul.mubr.f32.vlgmr.msra.gmra.mrb[8].mxu1 %v1012_v43  ;;  %1675 = vmatmul.mubr.f32.vlgmr.msra.gmra.mrb[10].mxu0 %v1010_v35 }
 0x18a   : > { %1719 = vmatpush3.bf16.xpose.msra.mxu1 %v1703_v45  ;;  %1681 = vmatprep.mubr.msk.f32.mxu1 %vm1764_vm7, %v1765_v51 }
 0x191   : > { %1682 = vmatmul.mubr.f32.vlgmr.msra.gmra.mrb[10].mxu1 %v1010_v35 }
 0x234   : > { %v548_v56 = vpop.f32.mrb[0].mxu0 }
 0x235   : > { %v1606_v57 = vpop.f32.mrb[1].mxu0 }
 0x23c   : > { %v629_v58 = vpop.f32.mrb[0].mxu1  ;;  %v705_v61 = vpop.f32.mrb[2].mxu0 }
 0x23d   : > { %v630_v59 = vadd.f32 %v629_v58, %v548_v56  ;;  %v1613_v60 = vpop.f32.mrb[1].mxu1  ;;  %v1620_v62 = vpop.f32.mrb[3].mxu0 }
 0x23f   : > { %v706_v63 = vadd.f32 %v705_v61, %v630_v59 }
 0x244   : > { %v780_v0 = vpop.f32.mrb[2].mxu1  ;;  %v857_v2 = vpop.f32.mrb[4].mxu0 }
 0x245   : > { %v781_v50 = vadd.f32 %v780_v0, %v706_v63  ;;  %v1627_v1 = vpop.f32.mrb[3].mxu1  ;;  %v1634_v5 = vpop.f32.mrb[5].mxu0 }
 0x247   : > { %v858_v6 = vadd.f32 %v857_v2, %v781_v50 }
 0x24c   : > { %v930_v8 = vpop.f32.mrb[4].mxu1  ;;  %v1016_v51 = vpop.f32.mrb[6].mxu0 }
 0x24d   : > { %v931_v9 = vadd.f32 %v930_v8, %v858_v6  ;;  %v1641_v10 = vpop.f32.mrb[5].mxu1  ;;  %v1648_v12 = vpop.f32.mrb[7].mxu0 }
 0x24f   : > { %v1017_v13 = vadd.f32 %v1016_v51, %v931_v9 }
 0x254   : > { %v1097_v14 = vpop.f32.mrb[6].mxu1  ;;  %v1173_v17 = vpop.f32.mrb[8].mxu0 }
 0x255   : > { %v1098_v15 = vadd.f32 %v1097_v14, %v1017_v13  ;;  %v1655_v16 = vpop.f32.mrb[7].mxu1  ;;  %v1662_v18 = vpop.f32.mrb[9].mxu0 }
 0x257   : > { %v1174_v19 = vadd.f32 %v1173_v17, %v1098_v15 }
 0x25c   : > { %v1248_v20 = vpop.f32.mrb[8].mxu1  ;;  %v1325_v23 = vpop.f32.mrb[10].mxu0 }
 0x25d   : > { %v1249_v21 = vadd.f32 %v1248_v20, %v1174_v19  ;;  %v1669_v22 = vpop.f32.mrb[9].mxu1  ;;  %v1676_v24 = vpop.f32.mrb[11].mxu0 }
 0x25f   : > { %v1326_v3 = vadd.f32 %v1325_v23, %v1249_v21 }
 0x264   : > { %v1398_v25 = vpop.f32.mrb[10].mxu1 }
 0x265   : > { %v1399_v27 = vadd.f32 %v1398_v25, %v1326_v3  ;;  %v1683_v28 = vpop.f32.mrb[11].mxu1 }
 0x267   : > { %v1409_v29 = vadd.f32 %v1559_v26, %v1399_v27 }
 0x269   : > { %1411 = vst.msk [vmem:[%s359_s9] sm:$0x3] %vm1410_vm8, %v1409_v29 }
 0x26a PF: > { %s18_s24 = sadd.s32 1, %s1760_s24  }
 0x26b   : > { %p15_p5 = scmp.ge.s32.totalorder %s18_s24, 6  }
 0x26d   :  { %17 = sbr.rel (!%p15_p5) target bundleno = 1 (0x1), region = 98 }

</bundles_post_ra>
